<compile_context>
chip_gen: v7x
topology: tpu7x:2x2x1
jax: 0.10.0
libtpu: 0.0.40
codegen_flags: <defaults>
</compile_context>

<pallas_src>
import functools
import math

import jax
import jax.numpy as jnp
from jax.experimental import pallas as pl
from jax.experimental.pallas import tpu as pltpu


def _round_up(n, m):
    return (n + m - 1) // m * m


def _word_embed_kernel(idx_ref, table_hbm, out_ref, rows_vmem, sems, *,
                       scale, block_tokens):
    """Gather `block_tokens` embedding rows with concurrent DMAs, scale, store.

    idx_ref   : SMEM scalar-prefetch ref, (n_pad,) int32 token ids.
    table_hbm : (V, D_pad) embedding table left in HBM (memory_space=pl.ANY).
    out_ref   : (block_tokens, D_pad) VMEM output tile (sublane/lane dense).
    rows_vmem : (block_tokens, D_pad) VMEM scratch for the gathered rows.
    sems      : (block_tokens,) DMA semaphores, one per in-flight row copy.
    """
    base = pl.program_id(0) * block_tokens

    # Issue all row gathers for this token block; they are all in flight at
    # once, so HBM latency is hidden by DMA-level parallelism.
    @pl.loop(0, block_tokens)
    def _start(t):
        row = idx_ref[base + t]
        pltpu.make_async_copy(table_hbm.at[row], rows_vmem.at[t],
                              sems.at[t]).start()

    @pl.loop(0, block_tokens)
    def _wait(t):
        pltpu.make_async_copy(table_hbm.at[0], rows_vmem.at[t],
                              sems.at[t]).wait()

    # One dense (block_tokens, D_pad) scaled store per grid step.
    out_ref[...] = rows_vmem[...] * scale


def word_embed(x, table, *, block_tokens=128):
    """x: (B, S) int32 token ids; table: (V, D) float32. Returns (B, S, D) f32."""
    B, S = x.shape
    V, D = table.shape
    n_tok = B * S
    scale = float(math.sqrt(D))

    # Lane-dense layout: pad embed dim to a multiple of 128 so stores are
    # unmasked full-tile vst (no-op for production D already 128-aligned).
    D_pad = _round_up(D, 128)
    if D_pad != D:
        table = jnp.pad(table, ((0, 0), (0, D_pad - D)))

    # Sublane-dense token blocks: T tokens per grid step, multiple of 8.
    T = min(block_tokens, _round_up(n_tok, 8))
    n_pad = _round_up(n_tok, T)
    num_blocks = n_pad // T

    # Token ids ride in SMEM via scalar prefetch; pad with id 0 (a valid row,
    # padded outputs are sliced off below).  For very large B*S, chunk the ids
    # over an outer grid axis instead to stay within SMEM.
    flat_idx = jnp.pad(x.reshape(n_tok).astype(jnp.int32), (0, n_pad - n_tok))

    out = pl.pallas_call(
        functools.partial(_word_embed_kernel, scale=scale, block_tokens=T),
        out_shape=jax.ShapeDtypeStruct((n_pad, D_pad), table.dtype),
        grid_spec=pltpu.PrefetchScalarGridSpec(
            num_scalar_prefetch=1,            # token ids land in SMEM
            grid=(num_blocks,),               # one grid step per T-token block
            in_specs=[pl.BlockSpec(memory_space=pl.ANY)],   # table stays in HBM
            out_specs=pl.BlockSpec((T, D_pad), lambda i, idx_ref: (i, 0)),
            scratch_shapes=[
                pltpu.VMEM((T, D_pad), table.dtype),        # gathered rows
                pltpu.SemaphoreType.DMA((T,)),              # per-row DMA sems
            ]),
        compiler_params=pltpu.CompilerParams(
            # Independent output tiles -> safe to shard across TCs (v7x).
            dimension_semantics=("parallel",)),
    )(flat_idx, table)

    return out[:n_tok, :D].reshape(B, S, D)


if __name__ == "__main__":
    vocab_size = 64
    embed_dim = 32
    batch, seq = 2, 8

    key = jax.random.PRNGKey(0)
    k_tab, k_idx = jax.random.split(key)

    # Deterministic "checkpoint": N(0,1) init like nn.Embedding's default.
    table = jax.random.normal(k_tab, (vocab_size, embed_dim), dtype=jnp.float32)
    x = jax.random.randint(k_idx, (batch, seq), 0, vocab_size, dtype=jnp.int32)

    out = word_embed(x, table)
    out = jax.block_until_ready(out)

    # Reference check in plain JAX (same semantics as the PyTorch module).
    ref = table[x] * math.sqrt(embed_dim)
    assert out.shape == (batch, seq, embed_dim)
    assert jnp.allclose(out, ref, atol=1e-6, rtol=1e-6)

    print("KERNEL_OK")
</pallas_src>

<mosaic_0001>
module attributes {stable_mosaic.version = 11 : i64} {
  func.func @_word_embed_kernel(%arg0: i32, %arg1: memref<16xi32, #tpu.memory_space<smem>>, %arg2: memref<64x128xf32, #tpu.memory_space<any>>, %arg3: memref<16x128xf32, #tpu.memory_space<vmem>>, %arg4: memref<16x128xf32, #tpu.memory_space<vmem>>, %arg5: memref<16x!tpu.dma_semaphore, #tpu.memory_space<semaphore_mem>>) attributes {dimension_semantics = [#tpu.dimension_semantics<parallel>], iteration_bounds = array<i64: 1>, scalar_prefetch = 1 : i64, scratch_operands = 2 : i64, tpu.core_type = #tpu.core_type<tc>, window_params = [{}, {transform_indices = @transform_1, window_bounds = array<i64: 16, 128>}]} {
    %c16_i32 = arith.constant 16 : i32
    %0 = arith.muli %arg0, %c16_i32 : i32
    %c0_i32 = arith.constant 0 : i32
    %c16_i32_0 = arith.constant 16 : i32
    %1 = arith.addi %c0_i32, %c16_i32_0 : i32
    %c1_i32 = arith.constant 1 : i32
    scf.for %arg6 = %c0_i32 to %1 step %c1_i32  : i32 {
      %c1_i32_9 = arith.constant 1 : i32
      %7 = arith.muli %arg6, %c1_i32_9 : i32
      %c0_i32_10 = arith.constant 0 : i32
      %8 = arith.addi %c0_i32_10, %7 : i32
      %9 = arith.addi %0, %8 : i32
      %10 = arith.index_cast %9 : i32 to index
      %11 = memref.load %arg1[%10] : memref<16xi32, #tpu.memory_space<smem>>
      %c0_i32_11 = arith.constant 0 : i32
      %12 = tpu.memref_slice %arg2[%11, %c0_i32_11] : memref<64x128xf32, #tpu.memory_space<any>> -> memref<1x128xf32, #tpu.memory_space<any>>
      %13 = tpu.memref_squeeze %12 : memref<1x128xf32, #tpu.memory_space<any>> -> memref<128xf32, #tpu.memory_space<any>>
      %c0_i32_12 = arith.constant 0 : i32
      %14 = tpu.memref_slice %arg4[%8, %c0_i32_12] : memref<16x128xf32, #tpu.memory_space<vmem>> -> memref<1x128xf32, #tpu.memory_space<vmem>>
      %15 = tpu.memref_squeeze %14 : memref<1x128xf32, #tpu.memory_space<vmem>> -> memref<128xf32, #tpu.memory_space<vmem>>
      %16 = tpu.memref_slice %arg5[%8] : memref<16x!tpu.dma_semaphore, #tpu.memory_space<semaphore_mem>> -> memref<1x!tpu.dma_semaphore, #tpu.memory_space<semaphore_mem>>
      %17 = tpu.memref_squeeze %16 : memref<1x!tpu.dma_semaphore, #tpu.memory_space<semaphore_mem>> -> memref<!tpu.dma_semaphore, #tpu.memory_space<semaphore_mem>>
      tpu.enqueue_dma source(%13 : memref<128xf32, #tpu.memory_space<any>>) target(%15 : memref<128xf32, #tpu.memory_space<vmem>>) target_semaphore(%17 : memref<!tpu.dma_semaphore, #tpu.memory_space<semaphore_mem>>)
    }
    %c16_i32_1 = arith.constant 16 : i32
    %c0_i32_2 = arith.constant 0 : i32
    %c16_i32_3 = arith.constant 16 : i32
    %2 = arith.addi %c0_i32_2, %c16_i32_3 : i32
    %c1_i32_4 = arith.constant 1 : i32
    scf.for %arg6 = %c0_i32_2 to %2 step %c1_i32_4  : i32 {
      %c1_i32_9 = arith.constant 1 : i32
      %7 = arith.muli %arg6, %c1_i32_9 : i32
      %c0_i32_10 = arith.constant 0 : i32
      %8 = arith.addi %c0_i32_10, %7 : i32
      %c0_i32_11 = arith.constant 0 : i32
      %c0_i32_12 = arith.constant 0 : i32
      %9 = tpu.memref_slice %arg2[%c0_i32_11, %c0_i32_12] : memref<64x128xf32, #tpu.memory_space<any>> -> memref<1x128xf32, #tpu.memory_space<any>>
      %10 = tpu.memref_squeeze %9 : memref<1x128xf32, #tpu.memory_space<any>> -> memref<128xf32, #tpu.memory_space<any>>
      %c0_i32_13 = arith.constant 0 : i32
      %11 = tpu.memref_slice %arg4[%8, %c0_i32_13] : memref<16x128xf32, #tpu.memory_space<vmem>> -> memref<1x128xf32, #tpu.memory_space<vmem>>
      %12 = tpu.memref_squeeze %11 : memref<1x128xf32, #tpu.memory_space<vmem>> -> memref<128xf32, #tpu.memory_space<vmem>>
      %13 = tpu.memref_slice %arg5[%8] : memref<16x!tpu.dma_semaphore, #tpu.memory_space<semaphore_mem>> -> memref<1x!tpu.dma_semaphore, #tpu.memory_space<semaphore_mem>>
      %14 = tpu.memref_squeeze %13 : memref<1x!tpu.dma_semaphore, #tpu.memory_space<semaphore_mem>> -> memref<!tpu.dma_semaphore, #tpu.memory_space<semaphore_mem>>
      tpu.wait_dma2 semaphore(%14 : memref<!tpu.dma_semaphore, #tpu.memory_space<semaphore_mem>>) src(%10 : memref<128xf32, #tpu.memory_space<any>>) dst(%12 : memref<128xf32, #tpu.memory_space<vmem>>)
    }
    %c16_i32_5 = arith.constant 16 : i32
    %c0 = arith.constant 0 : index
    %c0_6 = arith.constant 0 : index
    %3 = vector.load %arg4[%c0, %c0_6] : memref<16x128xf32, #tpu.memory_space<vmem>>, vector<16x128xf32>
    %cst = arith.constant 5.65685415 : f32
    %4 = vector.broadcast %cst : f32 to vector<16x128xf32>
    %5 = arith.mulf %3, %4 : vector<16x128xf32>
    %c0_7 = arith.constant 0 : index
    %c0_8 = arith.constant 0 : index
    %6 = vector.load %arg3[%c0_7, %c0_8] : memref<16x128xf32, #tpu.memory_space<vmem>>, vector<16x128xf32>
    tpu.vector_store %arg3[%c0_7, %c0_8], %5 {strides = array<i32>} : memref<16x128xf32, #tpu.memory_space<vmem>>, vector<16x128xf32>,
    return
  }
  func.func @transform_1(%arg0: i32, %arg1: memref<16xi32, #tpu.memory_space<smem>>) -> (i32, i32) {
    %c0_i32 = arith.constant 0 : i32
    %c0_i32_0 = arith.constant 0 : i32
    return %arg0, %c0_i32 : i32, i32
  }
}

</mosaic_0001>

<bundles_post_ra>
// kernel: tpu_custom_call.1
= control target key start
LH: loop header
LB: loop body
LE: loop exit
PB: predicated region body
PF: predicated region fallthrough
CT: control target
= control target key end

     0   :  { %s372_s0 = inlined_call_operand.hbm [shape: s32[16], index: 0, kind: input, shape index: {}]   ;;  %s373_s1 = inlined_call_operand.hbm [shape: f32[64,128], index: 1, kind: input, shape index: {}]   ;;  %s374_s2 = inlined_call_operand.hbm [shape: f32[16,128], index: 2, kind: output, shape index: {}]  }
   0x1   :  { %s230_s11 = scalar_lea.hbm %s372_s0, 16 }
   0x2   :  { %p231_p0 = scmp.ne.s32.totalorder %s372_s0, %s230_s11  ;;  %p234_p1 = scmp.lt.u32.totalorder %s230_s11, %s372_s0 }
   0x4   :  { %p236_p2 = pnand %p234_p1, %p231_p0 }
   0x6   :  { %239 = shalt.err (!%p236_p2)  }
   0x7   :  { %s308_s16 = smov [#allocation5]  }
   0x8   :  { %8 = dma.hbm_to_smem %s372_s0, 16, %s308_s16, [#allocation4] }
   0x9   :  { %294 = dma.done.wait [#allocation4], 16 }
   0xa   :  { %295 = vsyncadd [#allocation4], 4294967280 }
   0xb   :  { %10 = sfence }
   0xc   :  { %11 = vsyncpa [#allocation7], 0  ;;  %s340_s19 = smov 0  }
   0xd LB: > { %s20_s20 = sld [smem:[#allocation5 + %s302_s19]]  ;;  %s23_s21 = scalar_lea.vmem [#allocation2], %s302_s19  ;;  %s302_s19 = sphi %s340_s19, %s18_s19  }
   0xe   : > { %s32_s22 = sshll.u32 %s23_s21, 4  ;;  %s24_s26 = scalar_lea.sflag [#allocation3], %s302_s19  ;;  %s33_s22 = int_to_ptr.vmem [resolvable:$true] %s32_s22 }
   0xf   : > { %s242_s30 = scalar_lea.hbm %s373_s1, 1024 }
  0x13   : > { %s193_s23 = sshll.u32 %s20_s20, 4 }
  0x14   : > { %s22_s25 = scalar_lea.hbm %s373_s1, %s193_s23 }
  0x15   : > { %s240_s27 = scalar_lea.hbm %s22_s25, 16  ;;  %p243_p4 = scmp.lt.u32.totalorder %s22_s25, %s373_s1 }
  0x16   : > { %p241_p3 = scmp.ne.s32.totalorder %s22_s25, %s240_s27  ;;  %p244_p5 = scmp.lt.u32.totalorder %s242_s30, %s240_s27 }
  0x17   : > { %p246_p7 = scmp.lt.u32.totalorder %s240_s27, %s22_s25 }
  0x18   : > { %p245_p6 = por %p244_p5, %p243_p4 }
  0x1a   : > { %p247_p8 = por %p246_p7, %p245_p6 }
  0x1c   : > { %p248_p9 = pnand %p247_p8, %p241_p3 }
  0x1e   : > { %251 = shalt.err (!%p248_p9)  }
  0x1f   : > { %s252_s5 = scalar_lea.vmem %s33_s22, 16  ;;  %s309_s6 = smov [#allocation2]  }
  0x20   : > { %p253_p10 = scmp.ne.s32.totalorder %s33_s22, %s252_s5  ;;  %s254_s7 = sshll.u32 %s309_s6, 4  ;;  %s255_s7 = int_to_ptr.vmem [resolvable:$false] %s254_s7 }
  0x21   : > { %s256_s8 = scalar_lea.vmem %s255_s7, 256  ;;  %p257_p11 = scmp.lt.s32.totalorder %s33_s22, %s255_s7 }
  0x22   : > { %p258_p12 = scmp.lt.s32.totalorder %s256_s8, %s252_s5 }
  0x24   : > { %p259_p13 = por %p258_p12, %p257_p11 }
  0x26   : > { %p260_p0 = pnand %p259_p13, %p253_p10 }
  0x28   : > { %263 = shalt.err (!%p260_p0)  }
  0x29   : > { %35 = dma.hbm_to_vmem [thread:$0]  %s22_s25, 16, %s33_s22, %s24_s26 }
  0x2a   : > { %s18_s19 = sadd.s32 1, %s302_s19  }
  0x2b   : > { %p15_p1 = scmp.ge.s32.totalorder %s18_s19, 16  }
  0x2c   :  { %s304_s9 = smov (%p15_p1), 0  }
  0x2d   :  { %17 = sbr.rel (!%p15_p1) target bundleno = 13 (0xd), region = 57 }
  0x34 LB: > { %s42_s10 = scalar_lea.sflag [#allocation3], %s306_s9  ;;  %s306_s9 = sphi %s304_s9, %s41_s9  }
  0x35   : > { %296 = dma.done.wait %s42_s10, 16 }
  0x36   : > { %297 = vsyncadd %s42_s10, 4294967280  ;;  %s41_s9 = sadd.s32 1, %s306_s9  }
  0x37   : > { %p38_p2 = scmp.ge.s32.totalorder %s41_s9, 16  }
  0x38   :  { %v45_v0 = vld [vmem:[#allocation2] sm:$0xff] (%p38_p2)  ;;  %v46_v1 = vld [vmem:[#allocation2 + $0x8] sm:$0xff] (%p38_p2)  ;;  %s310_s11 = smov (%p38_p2), [#allocation6]  }
  0x39   :  { %40 = sbr.rel (!%p38_p2) target bundleno = 52 (0x34), region = 68  ;;  %v47_v2 = vmul.f32 (%p38_p2), 5.656854, %v45_v0  ;;  %v48_v3 = vmul.f32 (%p38_p2), 5.656854, %v46_v1  ;;  %s56_s12 = sshll.u32 (%p38_p2), %s310_s11, 4  ;;  %s57_s12 = int_to_ptr.vmem [resolvable:$true] %s56_s12 }
  0x3a   :  { %s264_s1 = scalar_lea.vmem (%p38_p2), %s57_s12, 256  ;;  %p269_p4 = scmp.lt.s32.totalorder (%p38_p2), %s57_s12, %s57_s12 }
  0x3b   :  { %49 = vst [vmem:[#allocation6] sm:$0xff] (%p38_p2), %v47_v2  ;;  %50 = vst [vmem:[#allocation6 + $0x8] sm:$0xff] (%p38_p2), %v48_v3  ;;  %p265_p3 = scmp.ne.s32.totalorder (%p38_p2), %s57_s12, %s264_s1  ;;  %p270_p5 = scmp.lt.s32.totalorder (%p38_p2), %s264_s1, %s264_s1 }
  0x3d   :  { %p271_p6 = por (%p38_p2), %p270_p5, %p269_p4 }
  0x3f   :  { %p272_p7 = pnand (%p38_p2), %p271_p6, %p265_p3 }
  0x41   :  { %275 = shalt.err (!%p272_p7)
}
  0x42   :  { %s276_s15 = scalar_lea.hbm %s374_s2, 256 }
  0x43   :  { %p277_p8 = scmp.ne.s32.totalorder %s374_s2, %s276_s15  ;;  %p280_p9 = scmp.lt.u32.totalorder %s276_s15, %s374_s2 }
  0x45   :  { %p282_p10 = pnand %p280_p9, %p277_p8 }
  0x47   :  { %285 = shalt.err (!%p282_p10)
}
  0x48   :  { %s311_s20 = smov 128   ;;  %s312_s21 = smov 8  }
  0x49   :  { %62 = dma.vmem_to_hbm [thread:$0]  %s57_s12, 256, %s374_s2, [#allocation7], %s311_s20, %s311_s20, %s312_s21  }
  0x4a   :  { %298 = dma.done.wait [#allocation7], 256  }
  0x4b   :  { %299 = vsyncadd [#allocation7], 4294967040 }
  0x4c   :  { %66 = vsyncpa [#allocation7], 1 }
  0x4d   :  { %67 = vsyncmov [#allocation3] }
  0x50   :  { %s68_s0 = vpop.sfrf %67 }
  0x51   :  { %p194_p11 = scmp.ne.s32.totalorder %s68_s0, 0 }
  0x53   :  { %72 = shalt.err (%p194_p11)  }
  0x54   :  { %74 = vsyncmov [#allocation3 + $0x1] }
  0x57   :  { %s75_s24 = vpop.sfrf %74 }
  0x58   :  { %p195_p12 = scmp.ne.s32.totalorder %s75_s24, 0 }
  0x5a   :  { %79 = shalt.err (%p195_p12)  }
  0x5b   :  { %81 = vsyncmov [#allocation3 + $0x2] }
  0x5e   :  { %s82_s25 = vpop.sfrf %81 }
  0x5f   :  { %p196_p13 = scmp.ne.s32.totalorder %s82_s25, 0 }
  0x61   :  { %86 = shalt.err (%p196_p13)  }
  0x62   :  { %88 = vsyncmov [#allocation3 + $0x3] }
  0x65   :  { %s89_s26 = vpop.sfrf %88 }
  0x66   :  { %p197_p0 = scmp.ne.s32.totalorder %s89_s26, 0 }
  0x68   :  { %93 = shalt.err (%p197_p0)  }
  0x69   :  { %95 = vsyncmov [#allocation3 + $0x4] }
  0x6c   :  { %s96_s2 = vpop.sfrf %95 }
  0x6d   :  { %p198_p1 = scmp.ne.s32.totalorder %s96_s2, 0 }
  0x6f   :  { %100 = shalt.err (%p198_p1)  }
  0x70   :  { %102 = vsyncmov [#allocation3 + $0x5] }
  0x73   :  { %s103_s27 = vpop.sfrf %102 }
  0x74   :  { %p199_p2 = scmp.ne.s32.totalorder %s103_s27, 0 }
  0x76   :  { %107 = shalt.err (%p199_p2)  }
  0x77   :  { %109 = vsyncmov [#allocation3 + $0x6] }
  0x7a   :  { %s110_s28 = vpop.sfrf %109 }
  0x7b   :  { %p200_p3 = scmp.ne.s32.totalorder %s110_s28, 0 }
  0x7d   :  { %114 = shalt.err (%p200_p3)  }
  0x7e   :  { %116 = vsyncmov [#allocation3 + $0x7] }
  0x81   :  { %s117_s29 = vpop.sfrf %116 }
  0x82   :  { %p201_p4 = scmp.ne.s32.totalorder %s117_s29, 0 }
  0x84   :  { %121 = shalt.err (%p201_p4)  }
  0x85   :  { %123 = vsyncmov [#allocation3 + $0x8] }
  0x88   :  { %s124_s30 = vpop.sfrf %123 }
  0x89   :  { %p202_p5 = scmp.ne.s32.totalorder %s124_s30, 0 }
  0x8b   :  { %128 = shalt.err (%p202_p5)  }
  0x8c   :  { %130 = vsyncmov [#allocation3 + $0x9] }
  0x8f   :  { %s131_s3 = vpop.sfrf %130 }
  0x90   :  { %p203_p6 = scmp.ne.s32.totalorder %s131_s3, 0 }
  0x92   :  { %135 = shalt.err (%p203_p6)  }
  0x93   :  { %137 = vsyncmov [#allocation3 + $0xa] }
  0x96   :  { %s138_s4 = vpop.sfrf %137 }
  0x97   :  { %p204_p7 = scmp.ne.s32.totalorder %s138_s4, 0 }
  0x99   :  { %142 = shalt.err (%p204_p7)  }
  0x9a   :  { %144 = vsyncmov [#allocation3 + $0xb] }
  0x9d   :  { %s145_s5 = vpop.sfrf %144 }
  0x9e   :  { %p205_p8 = scmp.ne.s32.totalorder %s145_s5, 0 }
  0xa0   :  { %149 = shalt.err (%p205_p8)  }
  0xa1   :  { %151 = vsyncmov [#allocation3 + $0xc] }
  0xa4   :  { %s152_s6 = vpop.sfrf %151 }
  0xa5   :  { %p206_p9 = scmp.ne.s32.totalorder %s152_s6, 0 }
  0xa7   :  { %156 = shalt.err (%p206_p9)  }
  0xa8   :  { %158 = vsyncmov [#allocation3 + $0xd] }
  0xab   :  { %s159_s7 = vpop.sfrf %158 }
  0xac   :  { %p207_p10 = scmp.ne.s32.totalorder %s159_s7, 0 }
  0xae   :  { %163 = shalt.err (%p207_p10)  }
  0xaf   :  { %165 = vsyncmov [#allocation3 + $0xe] }
  0xb2   :  { %s166_s8 = vpop.sfrf %165 }
  0xb3   :  { %p208_p11 = scmp.ne.s32.totalorder %s166_s8, 0 }
  0xb5   :  { %170 = shalt.err (%p208_p11)  }
  0xb6   :  { %172 = vsyncmov [#allocation3 + $0xf] }
  0xb9   :  { %s173_s9 = vpop.sfrf %172 }
  0xba   :  { %p209_p12 = scmp.ne.s32.totalorder %s173_s9, 0 }
  0xbc   :  { %177 = shalt.err (%p209_p12)  }

</bundles_post_ra>
